<compile_context>
chip_gen: v7x
topology: tpu7x:2x2x1
jax: 0.10.0
libtpu: 0.0.40
codegen_flags: <defaults>
</compile_context>

<pallas_src>
import jax
import jax.numpy as jnp
from jax.experimental import pallas as pl
from jax.experimental.pallas import tpu as pltpu

# fc sizes from the module: 8 -> 60 -> 88 -> 128 -> 80 -> 20 -> 10 -> 1
LAYER_SIZES = [8, 60, 88, 128, 80, 20, 10, 1]


def _round_up(n, m):
    return ((n + m - 1) // m) * m


# Feature dims padded to multiples of 8 (sublane granularity for f32).
PADDED_SIZES = [_round_up(s, 8) for s in LAYER_SIZES]  # [8, 64, 88, 128, 80, 24, 16, 8]


def mlp_kernel(x_ref,
               w1, b1, w2, b2, w3, b3, w4, b4, w5, b5, w6, b6, w7, b7,
               out_ref):
    """Runs the whole 7-layer MLP on one feature-major (8, TB) batch tile."""
    h = x_ref[...]                                   # (8, TB), batch on lanes

    def dense_relu(h, w_ref, b_ref):
        # (out_p, in_p) @ (in_p, TB) -> (out_p, TB); batch fills the MXU lanes.
        z = jnp.dot(w_ref[...], h, preferred_element_type=jnp.float32) + b_ref[...]
        return jnp.maximum(z, 0.0)

    h = dense_relu(h, w1, b1)            # fc1 + relu
    h = dense_relu(h, w2, b2)            # fc2 + relu (dropout1 = identity at inference)
    h = dense_relu(h, w3, b3)            # fc3 + relu (dropout2 = identity at inference)
    h = dense_relu(h, w4, b4)            # fc4 + relu
    h = dense_relu(h, w5, b5)            # fc5 + relu (dropout3 = identity at inference)
    h = dense_relu(h, w6, b6)            # fc6 + relu
    z = jnp.dot(w7[...], h, preferred_element_type=jnp.float32) + b7[...]   # (8, TB)
    # Only sublane 0 is the real fc7 output; store it lane-dense as (1, TB).
    out_ref[...] = jax.nn.sigmoid(z[0:1, :])


def mlp_forward(x, params, *, batch_tile=2048):
    """x: (B, 8) float32; params: tuple of PyTorch-native (w (out,in), b (out,)) pairs."""
    B, F = x.shape
    assert F == LAYER_SIZES[0]

    # Lane-aligned batch tile; pad the batch so B need not divide the tile.
    bt = min(batch_tile, _round_up(B, 128))
    bt = _round_up(bt, 128)
    B_pad = _round_up(B, bt)

    # Feature-major layout: (8, B_pad), batch on the 128-lane axis.
    xt = jnp.zeros((F, B_pad), jnp.float32).at[:, :B].set(x.astype(jnp.float32).T)

    # Zero-pad weights/biases to padded feature sizes once, wrapper-side.
    flat_params = []
    in_specs = [pl.BlockSpec((F, bt), lambda i: (0, i))]
    for li, (w, b) in enumerate(params):
        out_f, in_f = w.shape
        out_p, in_p = PADDED_SIZES[li + 1], PADDED_SIZES[li]
        w_p = jnp.zeros((out_p, in_p), jnp.float32).at[:out_f, :in_f].set(
            w.astype(jnp.float32))
        b_p = jnp.zeros((out_p, 1), jnp.float32).at[:out_f, 0].set(
            b.astype(jnp.float32))
        flat_params += [w_p, b_p]
        # Weights/biases are tiny; constant index_map keeps them VMEM-resident.
        in_specs.append(pl.BlockSpec(w_p.shape, lambda i: (0, 0)))
        in_specs.append(pl.BlockSpec(b_p.shape, lambda i: (0, 0)))

    out_spec = pl.BlockSpec((1, bt), lambda i: (0, i))   # lane-dense output tiles
    grid = (B_pad // bt,)

    out = pl.pallas_call(
        mlp_kernel,
        out_shape=jax.ShapeDtypeStruct((1, B_pad), jnp.float32),
        grid_spec=pltpu.PrefetchScalarGridSpec(
            num_scalar_prefetch=0,
            grid=grid,
            in_specs=in_specs,
            out_specs=out_spec,
        ),
        compiler_params=pltpu.CompilerParams(
            dimension_semantics=("parallel",),   # shards batch steps across TCs on v7x
        ),
    )(xt, *flat_params)

    # Drop batch padding and return the PyTorch-shaped (B, 1) result.
    return out[0, :B].reshape(B, 1)


def init_params(key):
    """Deterministic init mimicking PyTorch nn.Linear default (uniform +/- 1/sqrt(fan_in)).

    Weights are PyTorch-native (out_features, in_features); biases are (out_features,).
    """
    params = []
    for i in range(len(LAYER_SIZES) - 1):
        fan_in, fan_out = LAYER_SIZES[i], LAYER_SIZES[i + 1]
        key, kw, kb = jax.random.split(key, 3)
        bound = 1.0 / jnp.sqrt(jnp.float32(fan_in))
        w = jax.random.uniform(kw, (fan_out, fan_in), jnp.float32, -bound, bound)
        b = jax.random.uniform(kb, (fan_out,), jnp.float32, -bound, bound)
        params.append((w, b))
    return tuple(params)


def mlp_reference(x, params):
    """Plain-JAX reference (x @ W.T + b, relu between layers, sigmoid at the end)."""
    h = x
    for i, (w, b) in enumerate(params):
        h = h @ w.T + b
        if i < len(params) - 1:
            h = jnp.maximum(h, 0.0)
    return jax.nn.sigmoid(h)


if __name__ == "__main__":
    key = jax.random.PRNGKey(0)
    key, kx = jax.random.split(key)

    # Small, not tile-divisible batch on purpose: exercises batch padding + a
    # 2-step "parallel" grid (128-lane tiles).
    B = 200
    x = jax.random.normal(kx, (B, LAYER_SIZES[0]), jnp.float32)
    params = init_params(key)

    run = jax.jit(lambda x, p: mlp_forward(x, p, batch_tile=128))
    out = jax.block_until_ready(run(x, params))

    ref = mlp_reference(x, params)
    assert out.shape == (B, 1), f"bad output shape {out.shape}"
    assert jnp.allclose(out, ref, atol=1e-5, rtol=1e-5), "mismatch vs reference"

    print("KERNEL_OK")
</pallas_src>

<mosaic_0001>
module attributes {stable_mosaic.version = 11 : i64} {
  func.func @mlp_kernel(%arg0: i32, %arg1: memref<8x128xf32, #tpu.memory_space<vmem>>, %arg2: memref<64x8xf32, #tpu.memory_space<vmem>>, %arg3: memref<64x1xf32, #tpu.memory_space<vmem>>, %arg4: memref<88x64xf32, #tpu.memory_space<vmem>>, %arg5: memref<88x1xf32, #tpu.memory_space<vmem>>, %arg6: memref<128x88xf32, #tpu.memory_space<vmem>>, %arg7: memref<128x1xf32, #tpu.memory_space<vmem>>, %arg8: memref<80x128xf32, #tpu.memory_space<vmem>>, %arg9: memref<80x1xf32, #tpu.memory_space<vmem>>, %arg10: memref<24x80xf32, #tpu.memory_space<vmem>>, %arg11: memref<24x1xf32, #tpu.memory_space<vmem>>, %arg12: memref<16x24xf32, #tpu.memory_space<vmem>>, %arg13: memref<16x1xf32, #tpu.memory_space<vmem>>, %arg14: memref<8x16xf32, #tpu.memory_space<vmem>>, %arg15: memref<8x1xf32, #tpu.memory_space<vmem>>, %arg16: memref<1x128xf32, #tpu.memory_space<vmem>>) attributes {dimension_semantics = [#tpu.dimension_semantics<parallel>], iteration_bounds = array<i64: 2>, scalar_prefetch = 0 : i64, scratch_operands = 0 : i64, tpu.core_type = #tpu.core_type<tc>, window_params = [{transform_indices = @transform_0, window_bounds = array<i64: 8, 128>}, {pipeline_mode = #tpu.pipeline_mode<synchronous>, transform_indices = @transform_1, window_bounds = array<i64: 64, 8>}, {pipeline_mode = #tpu.pipeline_mode<synchronous>, transform_indices = @transform_2, window_bounds = array<i64: 64, 1>}, {pipeline_mode = #tpu.pipeline_mode<synchronous>, transform_indices = @transform_3, window_bounds = array<i64: 88, 64>}, {pipeline_mode = #tpu.pipeline_mode<synchronous>, transform_indices = @transform_4, window_bounds = array<i64: 88, 1>}, {pipeline_mode = #tpu.pipeline_mode<synchronous>, transform_indices = @transform_5, window_bounds = array<i64: 128, 88>}, {pipeline_mode = #tpu.pipeline_mode<synchronous>, transform_indices = @transform_6, window_bounds = array<i64: 128, 1>}, {pipeline_mode = #tpu.pipeline_mode<synchronous>, transform_indices = @transform_7, window_bounds = array<i64: 80, 128>}, {pipeline_mode = #tpu.pipeline_mode<synchronous>, transform_indices = @transform_8, window_bounds = array<i64: 80, 1>}, {pipeline_mode = #tpu.pipeline_mode<synchronous>, transform_indices = @transform_9, window_bounds = array<i64: 24, 80>}, {pipeline_mode = #tpu.pipeline_mode<synchronous>, transform_indices = @transform_10, window_bounds = array<i64: 24, 1>}, {pipeline_mode = #tpu.pipeline_mode<synchronous>, transform_indices = @transform_11, window_bounds = array<i64: 16, 24>}, {pipeline_mode = #tpu.pipeline_mode<synchronous>, transform_indices = @transform_12, window_bounds = array<i64: 16, 1>}, {pipeline_mode = #tpu.pipeline_mode<synchronous>, transform_indices = @transform_13, window_bounds = array<i64: 8, 16>}, {pipeline_mode = #tpu.pipeline_mode<synchronous>, transform_indices = @transform_14, window_bounds = array<i64: 8, 1>}, {transform_indices = @transform_15, window_bounds = array<i64: 1, 128>}]} {
    %c0 = arith.constant 0 : index
    %c0_0 = arith.constant 0 : index
    %0 = vector.load %arg1[%c0, %c0_0] : memref<8x128xf32, #tpu.memory_space<vmem>>, vector<8x128xf32>
    %c0_1 = arith.constant 0 : index
    %c0_2 = arith.constant 0 : index
    %1 = vector.load %arg2[%c0_1, %c0_2] : memref<64x8xf32, #tpu.memory_space<vmem>>, vector<64x8xf32>
    %cst = arith.constant dense<0.000000e+00> : vector<64x128xf32>
    %2 = tpu.matmul %1, %0, %cst {dimension_numbers = #tpu.dot_dimension_numbers<[1], [0], [0], [1], [0, 0, 1, 1], [], []>} : vector<64x8xf32>, vector<8x128xf32>, vector<64x128xf32> -> vector<64x128xf32>
    %c0_3 = arith.constant 0 : index
    %c0_4 = arith.constant 0 : index
    %3 = vector.load %arg3[%c0_3, %c0_4] : memref<64x1xf32, #tpu.memory_space<vmem>>, vector<64x1xf32>
    %4 = vector.broadcast %3 : vector<64x1xf32> to vector<64x128xf32>
    %5 = arith.addf %2, %4 : vector<64x128xf32>
    %cst_5 = arith.constant 0.000000e+00 : f32
    %6 = vector.broadcast %cst_5 : f32 to vector<64x128xf32>
    %7 = arith.maximumf %5, %6 : vector<64x128xf32>
    %c0_6 = arith.constant 0 : index
    %c0_7 = arith.constant 0 : index
    %8 = vector.load %arg4[%c0_6, %c0_7] : memref<88x64xf32, #tpu.memory_space<vmem>>, vector<88x64xf32>
    %cst_8 = arith.constant dense<0.000000e+00> : vector<88x128xf32>
    %9 = tpu.matmul %8, %7, %cst_8 {dimension_numbers = #tpu.dot_dimension_numbers<[1], [0], [0], [1], [0, 0, 1, 1], [], []>} : vector<88x64xf32>, vector<64x128xf32>, vector<88x128xf32> -> vector<88x128xf32>
    %c0_9 = arith.constant 0 : index
    %c0_10 = arith.constant 0 : index
    %10 = vector.load %arg5[%c0_9, %c0_10] : memref<88x1xf32, #tpu.memory_space<vmem>>, vector<88x1xf32>
    %11 = vector.broadcast %10 : vector<88x1xf32> to vector<88x128xf32>
    %12 = arith.addf %9, %11 : vector<88x128xf32>
    %cst_11 = arith.constant 0.000000e+00 : f32
    %13 = vector.broadcast %cst_11 : f32 to vector<88x128xf32>
    %14 = arith.maximumf %12, %13 : vector<88x128xf32>
    %c0_12 = arith.constant 0 : index
    %c0_13 = arith.constant 0 : index
    %15 = vector.load %arg6[%c0_12, %c0_13] : memref<128x88xf32, #tpu.memory_space<vmem>>, vector<128x88xf32>
    %cst_14 = arith.constant dense<0.000000e+00> : vector<128x128xf32>
    %16 = tpu.matmul %15, %14, %cst_14 {dimension_numbers = #tpu.dot_dimension_numbers<[1], [0], [0], [1], [0, 0, 1, 1], [], []>} : vector<128x88xf32>, vector<88x128xf32>, vector<128x128xf32> -> vector<128x128xf32>
    %c0_15 = arith.constant 0 : index
    %c0_16 = arith.constant 0 : index
    %17 = vector.load %arg7[%c0_15, %c0_16] : memref<128x1xf32, #tpu.memory_space<vmem>>, vector<128x1xf32>
    %18 = vector.broadcast %17 : vector<128x1xf32> to vector<128x128xf32>
    %19 = arith.addf %16, %18 : vector<128x128xf32>
    %cst_17 = arith.constant 0.000000e+00 : f32
    %20 = vector.broadcast %cst_17 : f32 to vector<128x128xf32>
    %21 = arith.maximumf %19, %20 : vector<128x128xf32>
    %c0_18 = arith.constant 0 : index
    %c0_19 = arith.constant 0 : index
    %22 = vector.load %arg8[%c0_18, %c0_19] : memref<80x128xf32, #tpu.memory_space<vmem>>, vector<80x128xf32>
    %cst_20 = arith.constant dense<0.000000e+00> : vector<80x128xf32>
    %23 = tpu.matmul %22, %21, %cst_20 {dimension_numbers = #tpu.dot_dimension_numbers<[1], [0], [0], [1], [0, 0, 1, 1], [], []>} : vector<80x128xf32>, vector<128x128xf32>, vector<80x128xf32> -> vector<80x128xf32>
    %c0_21 = arith.constant 0 : index
    %c0_22 = arith.constant 0 : index
    %24 = vector.load %arg9[%c0_21, %c0_22] : memref<80x1xf32, #tpu.memory_space<vmem>>, vector<80x1xf32>
    %25 = vector.broadcast %24 : vector<80x1xf32> to vector<80x128xf32>
    %26 = arith.addf %23, %25 : vector<80x128xf32>
    %cst_23 = arith.constant 0.000000e+00 : f32
    %27 = vector.broadcast %cst_23 : f32 to vector<80x128xf32>
    %28 = arith.maximumf %26, %27 : vector<80x128xf32>
    %c0_24 = arith.constant 0 : index
    %c0_25 = arith.constant 0 : index
    %29 = vector.load %arg10[%c0_24, %c0_25] : memref<24x80xf32, #tpu.memory_space<vmem>>, vector<24x80xf32>
    %cst_26 = arith.constant dense<0.000000e+00> : vector<24x128xf32>
    %30 = tpu.matmul %29, %28, %cst_26 {dimension_numbers = #tpu.dot_dimension_numbers<[1], [0], [0], [1], [0, 0, 1, 1], [], []>} : vector<24x80xf32>, vector<80x128xf32>, vector<24x128xf32> -> vector<24x128xf32>
    %c0_27 = arith.constant 0 : index
    %c0_28 = arith.constant 0 : index
    %31 = vector.load %arg11[%c0_27, %c0_28] : memref<24x1xf32, #tpu.memory_space<vmem>>, vector<24x1xf32>
    %32 = vector.broadcast %31 : vector<24x1xf32> to vector<24x128xf32>
    %33 = arith.addf %30, %32 : vector<24x128xf32>
    %cst_29 = arith.constant 0.000000e+00 : f32
    %34 = vector.broadcast %cst_29 : f32 to vector<24x128xf32>
    %35 = arith.maximumf %33, %34 : vector<24x128xf32>
    %c0_30 = arith.constant 0 : index
    %c0_31 = arith.constant 0 : index
    %36 = vector.load %arg12[%c0_30, %c0_31] : memref<16x24xf32, #tpu.memory_space<vmem>>, vector<16x24xf32>
    %cst_32 = arith.constant dense<0.000000e+00> : vector<16x128xf32>
    %37 = tpu.matmul %36, %35, %cst_32 {dimension_numbers = #tpu.dot_dimension_numbers<[1], [0], [0], [1], [0, 0, 1, 1], [], []>} : vector<16x24xf32>, vector<24x128xf32>, vector<16x128xf32> -> vector<16x128xf32>
    %c0_33 = arith.constant 0 : index
    %c0_34 = arith.constant 0 : index
    %38 = vector.load %arg13[%c0_33, %c0_34] : memref<16x1xf32, #tpu.memory_space<vmem>>, vector<16x1xf32>
    %39 = vector.broadcast %38 : vector<16x1xf32> to vector<16x128xf32>
    %40 = arith.addf %37, %39 : vector<16x128xf32>
    %cst_35 = arith.constant 0.000000e+00 : f32
    %41 = vector.broadcast %cst_35 : f32 to vector<16x128xf32>
    %42 = arith.maximumf %40, %41 : vector<16x128xf32>
    %c0_36 = arith.constant 0 : index
    %c0_37 = arith.constant 0 : index
    %43 = vector.load %arg14[%c0_36, %c0_37] : memref<8x16xf32, #tpu.memory_space<vmem>>, vector<8x16xf32>
    %cst_38 = arith.constant dense<0.000000e+00> : vector<8x128xf32>
    %44 = tpu.matmul %43, %42, %cst_38 {dimension_numbers = #tpu.dot_dimension_numbers<[1], [0], [0], [1], [0, 0, 1, 1], [], []>} : vector<8x16xf32>, vector<16x128xf32>, vector<8x128xf32> -> vector<8x128xf32>
    %c0_39 = arith.constant 0 : index
    %c0_40 = arith.constant 0 : index
    %45 = vector.load %arg15[%c0_39, %c0_40] : memref<8x1xf32, #tpu.memory_space<vmem>>, vector<8x1xf32>
    %46 = vector.broadcast %45 : vector<8x1xf32> to vector<8x128xf32>
    %47 = arith.addf %44, %46 : vector<8x128xf32>
    %48 = vector.extract_strided_slice %47 {offsets = [0, 0], sizes = [1, 128], strides = [1, 1]} : vector<8x128xf32> to vector<1x128xf32>
    %49 = arith.negf %48 : vector<1x128xf32>
    %50 = math.exp %49 : vector<1x128xf32>
    %cst_41 = arith.constant 1.000000e+00 : f32
    %51 = vector.broadcast %cst_41 : f32 to vector<1x128xf32>
    %52 = arith.addf %51, %50 : vector<1x128xf32>
    %53 = arith.divf %51, %52 : vector<1x128xf32>
    %c0_42 = arith.constant 0 : index
    %c0_43 = arith.constant 0 : index
    %54 = vector.load %arg16[%c0_42, %c0_43] : memref<1x128xf32, #tpu.memory_space<vmem>>, vector<1x128xf32>
    tpu.vector_store %arg16[%c0_42, %c0_43], %53 {strides = array<i32>} : memref<1x128xf32, #tpu.memory_space<vmem>>, vector<1x128xf32>,
    return
  }
  func.func @transform_0(%arg0: i32) -> (i32, i32) {
    %c0_i32 = arith.constant 0 : i32
    %c0_i32_0 = arith.constant 0 : i32
    return %c0_i32, %arg0 : i32, i32
  }
  func.func @transform_1(%arg0: i32) -> (i32, i32) {
    %c0_i32 = arith.constant 0 : i32
    %c0_i32_0 = arith.constant 0 : i32
    %c0_i32_1 = arith.constant 0 : i32
    return %c0_i32, %c0_i32_0 : i32, i32
  }
  func.func @transform_2(%arg0: i32) -> (i32, i32) {
    %c0_i32 = arith.constant 0 : i32
    %c0_i32_0 = arith.constant 0 : i32
    %c0_i32_1 = arith.constant 0 : i32
    return %c0_i32, %c0_i32_0 : i32, i32
  }
  func.func @transform_3(%arg0: i32) -> (i32, i32) {
    %c0_i32 = arith.constant 0 : i32
    %c0_i32_0 = arith.constant 0 : i32
    %c0_i32_1 = arith.constant 0 : i32
    return %c0_i32, %c0_i32_0 : i32, i32
  }
  func.func @transform_4(%arg0: i32) -> (i32, i32) {
    %c0_i32 = arith.constant 0 : i32
    %c0_i32_0 = arith.constant 0 : i32
    %c0_i32_1 = arith.constant 0 : i32
    return %c0_i32, %c0_i32_0 : i32, i32
  }
  func.func @transform_5(%arg0: i32) -> (i32, i32) {
    %c0_i32 = arith.constant 0 : i32
    %c0_i32_0 = arith.constant 0 : i32
    %c0_i32_1 = arith.constant 0 : i32
    return %c0_i32, %c0_i32_0 : i32, i32
  }
  func.func @transform_6(%arg0: i32) -> (i32, i32) {
    %c0_i32 = arith.constant 0 : i32
    %c0_i32_0 = arith.constant 0 : i32
    %c0_i32_1 = arith.constant 0 : i32
    return %c0_i32, %c0_i32_0 : i32, i32
  }
  func.func @transform_7(%arg0: i32) -> (i32, i32) {
    %c0_i32 = arith.constant 0 : i32
    %c0_i32_0 = arith.constant 0 : i32
    %c0_i32_1 = arith.constant 0 : i32
    return %c0_i32, %c0_i32_0 : i32, i32
  }
  func.func @transform_8(%arg0: i32) -> (i32, i32) {
    %c0_i32 = arith.constant 0 : i32
    %c0_i32_0 = arith.constant 0 : i32
    %c0_i32_1 = arith.constant 0 : i32
    return %c0_i32, %c0_i32_0 : i32, i32
  }
  func.func @transform_9(%arg0: i32) -> (i32, i32) {
    %c0_i32 = arith.constant 0 : i32
    %c0_i32_0 = arith.constant 0 : i32
    %c0_i32_1 = arith.constant 0 : i32
    return %c0_i32, %c0_i32_0 : i32, i32
  }
  func.func @transform_10(%arg0: i32) -> (i32, i32) {
    %c0_i32 = arith.constant 0 : i32
    %c0_i32_0 = arith.constant 0 : i32
    %c0_i32_1 = arith.constant 0 : i32
    return %c0_i32, %c0_i32_0 : i32, i32
  }
  func.func @transform_11(%arg0: i32) -> (i32, i32) {
    %c0_i32 = arith.constant 0 : i32
    %c0_i32_0 = arith.constant 0 : i32
    %c0_i32_1 = arith.constant 0 : i32
    return %c0_i32, %c0_i32_0 : i32, i32
  }
  func.func @transform_12(%arg0: i32) -> (i32, i32) {
    %c0_i32 = arith.constant 0 : i32
    %c0_i32_0 = arith.constant 0 : i32
    %c0_i32_1 = arith.constant 0 : i32
    return %c0_i32, %c0_i32_0 : i32, i32
  }
  func.func @transform_13(%arg0: i32) -> (i32, i32) {
    %c0_i32 = arith.constant 0 : i32
    %c0_i32_0 = arith.constant 0 : i32
    %c0_i32_1 = arith.constant 0 : i32
    return %c0_i32, %c0_i32_0 : i32, i32
  }
  func.func @transform_14(%arg0: i32) -> (i32, i32) {
    %c0_i32 = arith.constant 0 : i32
    %c0_i32_0 = arith.constant 0 : i32
    %c0_i32_1 = arith.constant 0 : i32
    return %c0_i32, %c0_i32_0 : i32, i32
  }
  func.func @transform_15(%arg0: i32) -> (i32, i32) {
    %c0_i32 = arith.constant 0 : i32
    %c0_i32_0 = arith.constant 0 : i32
    return %c0_i32, %arg0 : i32, i32
  }
}

</mosaic_0001>

<bundles_post_ra>
// kernel: _lambda_.1
= control target key start
LH: loop header
LB: loop body
LE: loop exit
PB: predicated region body
PF: predicated region fallthrough
CT: control target
= control target key end

     0   :  { %s2338_s18 = smov 0   ;;  %s2742_s0 = inlined_call_operand.vmem [shape: f32[8,256], index: 0, kind: input, shape index: {}]   ;;  %s2743_s1 = inlined_call_operand.vmem [shape: f32[64,8], index: 1, kind: input, shape index: {}]   ;;  %s2744_s2 = inlined_call_operand.vmem [shape: f32[64,1], index: 2, kind: input, shape index: {}]   ;;  %s2745_s3 = inlined_call_operand.vmem [shape: f32[88,64], index: 3, kind: input, shape index: {}]   ;;  %s2746_s4 = inlined_call_operand.vmem [shape: f32[88,1], index: 4, kind: input, shape index: {}]   ;;  %s2747_s5 = inlined_call_operand.vmem [shape: f32[128,88], index: 5, kind: input, shape index: {}]   ;;  %s2748_s6 = inlined_call_operand.vmem [shape: f32[128,1], index: 6, kind: input, shape index: {}]   ;;  %s2749_s7 = inlined_call_operand.vmem [shape: f32[80,128], index: 7, kind: input, shape index: {}]   ;;  %s2750_s8 = inlined_call_operand.vmem [shape: f32[80,1], index: 8, kind: input, shape index: {}]   ;;  %s2751_s9 = inlined_call_operand.vmem [shape: f32[24,80], index: 9, kind: input, shape index: {}]   ;;  %s2752_s10 = inlined_call_operand.vmem [shape: f32[24,1], index: 10, kind: input, shape index: {}]   ;;  %s2753_s11 = inlined_call_operand.vmem [shape: f32[16,24], index: 11, kind: input, shape index: {}]   ;;  %s2754_s12 = inlined_call_operand.vmem [shape: f32[16,1], index: 12, kind: input, shape index: {}]   ;;  %s2755_s13 = inlined_call_operand.vmem [shape: f32[8,16], index: 13, kind: input, shape index: {}]   ;;  %s2756_s14 = inlined_call_operand.vmem [shape: f32[8,1], index: 14, kind: input, shape index: {}]   ;;  %s2757_s15 = inlined_call_operand.vmem [shape: f32[1,256], index: 15, kind: output, shape index: {}]  }
   0x1 LB: > { %s1789_s19 = sadd.s32 4294967295, %s2252_s18   ;;  %p1793_p0 = scmp.ge.s32.totalorder %s2252_s18, 1  ;;  %s2252_s18 = sphi %s2338_s18, %s25_s18  }
   0x2   : > { %p436_p1 = scmp.lt.s32.totalorder %s2252_s18, 3 }
   0x4   : > { %p437_p2 = pnand %p1793_p0, %p436_p1 }
   0x5   : > { %v499_v0 = vld [vmem:[%s2744_s2 + $0x10] sm:$0xff] (!%p437_p2)  ;;  %v497_v1 = vld [vmem:[%s2744_s2] sm:$0xff] (!%p437_p2)  ;;  %p481_p3 = scmp.lt.s32.totalorder (!%p437_p2), %s1789_s19, 1  ;;  %vm545_vm0 = vcmask (!%p437_p2), 64512   ;;  %v2254_v2 = vmov (!%p437_p2), 0   ;;  %v500_v4 = vld [vmem:[%s2744_s2 + $0x18] sm:$0xff] (!%p437_p2) }
   0x6   : > { %440 = sbr.rel (%p437_p2) target bundleno = 1693 (0x69d), region = 80  ;;  %2241 = vset.pattern.permute.xlu1 (!%p437_p2), %v2254_v2  ;;  %2240 = vset.pattern.permute.xlu0 (!%p437_p2), %v2254_v2  ;;  %v489_v3 = vld [vmem:[%s2743_s1] sm:$0xff] (!%p437_p2)  ;;  %v498_v5 = vld [vmem:[%s2744_s2 + $0x8] sm:$0xff] (!%p437_p2)  ;;  %v491_v10 = vld [vmem:[%s2743_s1 + $0x10] sm:$0xff] (!%p437_p2)  ;;  %v2255_v61 = vmov (!%p437_p2), 0.0|0.0   ;;  %vm2256_vm1 = vmmov (!%p437_p2), 0  }
   0x7   : > { %517 = vperm.xlu1 (!%p437_p2), %2241, %v499_v0   ;;  %507 = vperm.xlu0 (!%p437_p2), %2240, %v497_v1   ;;  %v490_v7 = vld [vmem:[%s2743_s1 + $0x8] sm:$0xff] (!%p437_p2)  ;;  %v501_v9 = vld [vmem:[%s2744_s2 + $0x20] sm:$0xff] (!%p437_p2)  ;;  %v492_v11 = vld [vmem:[%s2743_s1 + $0x18] sm:$0xff] (!%p437_p2)  ;;  %v2257_v62 = vmov (!%p437_p2), 0.0   ;;  %vm760_vm2 = vcmask (!%p437_p2), 523264   ;;  %vm1037_vm3 = vcmask (!%p437_p2), 719872  }
   0x8   : > { %1943 = vmatprep.mubr.msk.f32.mxu1 (!%p437_p2), %vm545_vm0, %v489_v3  ;;  %v502_v8 = vld [vmem:[%s2744_s2 + $0x28] sm:$0xff] (!%p437_p2)  ;;  %v504_v12 = vld [vmem:[%s2744_s2 + $0x38] sm:$0xff] (!%p437_p2)  ;;  %v503_v13 = vld [vmem:[%s2744_s2 + $0x30] sm:$0xff] (!%p437_p2)  ;;  %vm1463_vm4 = vcmask (!%p437_p2), 654336   ;;  %vm1570_vm5 = vcmask (!%p437_p2), 195584   ;;  %vm1661_vm6 = vcmask (!%p437_p2), 130048  }
   0x9   : > { %v493_v14 = vld [vmem:[%s2743_s1 + $0x20] sm:$0xff] (!%p437_p2)  ;;  %v494_v15 = vld [vmem:[%s2743_s1 + $0x28] sm:$0xff] (!%p437_p2)  ;;  %v495_v18 = vld [vmem:[%s2743_s1 + $0x30] sm:$0xff] (!%p437_p2) }
   0xa   : > { %v695_v16 = vld [vmem:[%s2746_s4 + $0x8] sm:$0xff] (!%p437_p2)  ;;  %v694_v17 = vld [vmem:[%s2746_s4] sm:$0xff] (!%p437_p2)  ;;  %v496_v19 = vld [vmem:[%s2743_s1 + $0x38] sm:$0xff] (!%p437_p2) }
   0xb   : > { %522 = vperm.xlu1 (!%p437_p2), %2241, %v500_v4   ;;  %512 = vperm.xlu0 (!%p437_p2), %2240, %v498_v5   ;;  %v697_v20 = vld [vmem:[%s2746_s4 + $0x18] sm:$0xff] (!%p437_p2)  ;;  %v696_v21 = vld [vmem:[%s2746_s4 + $0x10] sm:$0xff] (!%p437_p2)  ;;  %v699_v22 = vld [vmem:[%s2746_s4 + $0x28] sm:$0xff] (!%p437_p2) }
   0xc   : > { %v698_v23 = vld [vmem:[%s2746_s4 + $0x20] sm:$0xff] (!%p437_p2)  ;;  %v701_v24 = vld [vmem:[%s2746_s4 + $0x38] sm:$0xff] (!%p437_p2)  ;;  %v700_v25 = vld [vmem:[%s2746_s4 + $0x30] sm:$0xff] (!%p437_p2) }
   0xd   : > { %s2759_s19 = smov (!%p481_p3, %s1789_s19), 1  ;;  %v703_v26 = vld [vmem:[%s2746_s4 + $0x48] sm:$0xff]  ;;  %v702_v27 = vld [vmem:[%s2746_s4 + $0x40] sm:$0xff]  ;;  %v704_v29 = vld [vmem:[%s2746_s4 + $0x50] sm:$0xff] }
   0xe   : > { %s1794_s30 = sshll.u32 %s2759_s19, 3  ;;  %v941_v28 = vld [vmem:[%s2748_s6] sm:$0xff]  ;;  %v943_v30 = vld [vmem:[%s2748_s6 + $0x10] sm:$0xff]  ;;  %v942_v31 = vld [vmem:[%s2748_s6 + $0x8] sm:$0xff]  ;;  %s487_s22 = scalar_lea.vmem %s2757_s15, %s2759_s19 }
   0xf   : > { %s484_s20 = scalar_lea.vmem %s2742_s0, %s1794_s30  ;;  %532 = vperm.xlu1 %2241, %v502_v8   ;;  %527 = vperm.xlu0 %2240, %v501_v9   ;;  %v945_v32 = vld [vmem:[%s2748_s6 + $0x20] sm:$0xff]  ;;  %v944_v33 = vld [vmem:[%s2748_s6 + $0x18] sm:$0xff]  ;;  %v947_v34 = vld [vmem:[%s2748_s6 + $0x30] sm:$0xff] }
  0x10   : > { %v488_v6 = vld [vmem:[%s484_s20] sm:$0xff]  ;;  %v946_v35 = vld [vmem:[%s2748_s6 + $0x28] sm:$0xff]  ;;  %v948_v37 = vld [vmem:[%s2748_s6 + $0x38] sm:$0xff] }
  0x11   : > { %1941 = vmatprep.subr.mxu1 %v488_v6  ;;  %v949_v36 = vld [vmem:[%s2748_s6 + $0x40] sm:$0xff]  ;;  %v951_v38 = vld [vmem:[%s2748_s6 + $0x50] sm:$0xff]  ;;  %v950_v39 = vld [vmem:[%s2748_s6 + $0x48] sm:$0xff] }
  0x12   : > { %1942 = vmatpush3.msra.mxu1 %v488_v6  ;;  %v953_v40 = vld [vmem:[%s2748_s6 + $0x60] sm:$0xff]  ;;  %v952_v41 = vld [vmem:[%s2748_s6 + $0x58] sm:$0xff]  ;;  %v955_v42 = vld [vmem:[%s2748_s6 + $0x70] sm:$0xff] }
  0x13   : > { %1944 = vmatmul.mubr.msk.f32.vlgmr.msra.gmra.mrb[0].mxu1 %vm545_vm0, %v490_v7  ;;  %542 = vperm.xlu1 %2241, %v504_v12   ;;  %v954_v43 = vld [vmem:[%s2748_s6 + $0x68] sm:$0xff]  ;;  %v1257_v44 = vld [vmem:[%s2750_s8] sm:$0xff]  ;;  %v956_v45 = vld [vmem:[%s2748_s6 + $0x78] sm:$0xff] }
  0x14   : > { %1946 = vmatprep.mubr.msk.f32.mxu1 %vm545_vm0, %v491_v10  ;;  %537 = vperm.xlu0 %2240, %v503_v13   ;;  %v1259_v46 = vld [vmem:[%s2750_s8 + $0x10] sm:$0xff]  ;;  %v1258_v47 = vld [vmem:[%s2750_s8 + $0x8] sm:$0xff]  ;;  %v1261_v48 = vld [vmem:[%s2750_s8 + $0x20] sm:$0xff] }
  0x15   : > { %v1260_v49 = vld [vmem:[%s2750_s8 + $0x18] sm:$0xff]  ;;  %v1263_v50 = vld [vmem:[%s2750_s8 + $0x30] sm:$0xff]  ;;  %v1262_v51 = vld [vmem:[%s2750_s8 + $0x28] sm:$0xff]  ;;  %2142 = vmatprep.subr.bf16.mxu1 %v2255_v61 }
  0x16   : > { %v1265_v52 = vld [vmem:[%s2750_s8 + $0x40] sm:$0xff]  ;;  %v1264_v53 = vld [vmem:[%s2750_s8 + $0x38] sm:$0xff]  ;;  %v1266_v55 = vld [vmem:[%s2750_s8 + $0x48] sm:$0xff] }
  0x17   : > { %1947 = vmatmul.mubr.msk.f32.gmra.mrb[2].mxu1 %vm545_vm0, %v492_v11  ;;  %712 = vperm.xlu1 %2241, %v695_v16   ;;  %v1445_v54 = vld [vmem:[%s2752_s10] sm:$0xff]  ;;  %v1447_v56 = vld [vmem:[%s2752_s10 + $0x10] sm:$0xff]  ;;  %v1446_v57 = vld [vmem:[%s2752_s10 + $0x8] sm:$0xff] }
  0x18   : > { %1949 = vmatprep.mubr.msk.f32.mxu1 %vm545_vm0, %v493_v14  ;;  %707 = vperm.xlu0 %2240, %v694_v17   ;;  %v1559_v58 = vld [vmem:[%s2754_s12 + $0x8] sm:$0xff]  ;;  %v1558_v59 = vld [vmem:[%s2754_s12] sm:$0xff] }
  0x19   : > { %v1655_v60 = vld [vmem:[%s2756_s14] sm:$0xff] }
  0x1b   : > { %1950 = vmatmul.mubr.msk.f32.gmra.mrb[4].mxu1 %vm545_vm0, %v494_v15  ;;  %722 = vperm.xlu1 %2241, %v697_v20  }
  0x1c   : > { %1952 = vmatprep.mubr.msk.f32.mxu1 %vm545_vm0, %v495_v18  ;;  %717 = vperm.xlu0 %2240, %v696_v21  }
  0x1f   : > { %1953 = vmatmul.mubr.msk.f32.gmra.mrb[6].mxu1 %vm545_vm0, %v496_v19  ;;  %732 = vperm.xlu1 %2241, %v699_v22  }
  0x20   : > { %727 = vperm.xlu0 %2240, %v698_v23   ;;  %1971 = vmatprep.mubr.msk.f32.mxu1 %vm2256_vm1, %v2257_v62 }
  0x23   : > { %742 = vperm.xlu1 %2241, %v701_v24  }
  0x24   : > { %737 = vperm.xlu0 %2240, %v700_v25  }
  0x27   : > { %752 = vperm.xlu1 %2241, %v703_v26  }
  0x28   : > { %747 = vperm.xlu0 %2240, %v702_v27  }
  0x2b   : > { %959 = vperm.xlu1 %2241, %v941_v28  }
  0x2c   : > { %757 = vperm.xlu0 %2240, %v704_v29  }
  0x2f   : > { %969 = vperm.xlu1 %2241, %v943_v30  }
  0x30   : > { %964 = vperm.xlu0 %2240, %v942_v31  }
  0x33   : > { %979 = vperm.xlu1 %2241, %v945_v32  }
  0x34   : > { %974 = vperm.xlu0 %2240, %v944_v33  }
  0x37   : > { %989 = vperm.xlu1 %2241, %v947_v34  }
  0x38   : > { %984 = vperm.xlu0 %2240, %v946_v35   ;;  %v683_v35 = vld [vmem:[%s2745_s3] sm:$0xff] }
  0x3b   : > { %999 = vperm.xlu1 %2241, %v949_v36   ;;  %v684_v36 = vld [vmem:[%s2745_s3 + $0x8] sm:$0xff] }
  0x3c   : > { %994 = vperm.xlu0 %2240, %v948_v37   ;;  %v685_v37 = vld [vmem:[%s2745_s3 + $0x10] sm:$0xff] }
  0x3f   : > { %1009 = vperm.xlu1 %2241, %v951_v38   ;;  %v686_v38 = vld [vmem:[%s2745_s3 + $0x18] sm:$0xff] }
  0x40   : > { %1004 = vperm.xlu0 %2240, %v950_v39   ;;  %v687_v39 = vld [vmem:[%s2745_s3 + $0x20] sm:$0xff] }
  0x43   : > { %1019 = vperm.xlu1 %2241, %v953_v40   ;;  %v688_v40 = vld [vmem:[%s2745_s3 + $0x28] sm:$0xff] }
  0x44   : > { %1014 = vperm.xlu0 %2240, %v952_v41   ;;  %v689_v41 = vld [vmem:[%s2745_s3 + $0x30] sm:$0xff] }
  0x47   : > { %1029 = vperm.xlu1 %2241, %v955_v42   ;;  %v690_v42 = vld [vmem:[%s2745_s3 + $0x38] sm:$0xff] }
  0x48   : > { %1024 = vperm.xlu0 %2240, %v954_v43   ;;  %v691_v43 = vld [vmem:[%s2745_s3 + $0x40] sm:$0xff] }
  0x4b   : > { %1269 = vperm.xlu1 %2241, %v1257_v44   ;;  %v692_v44 = vld [vmem:[%s2745_s3 + $0x48] sm:$0xff] }
  0x4c   : > { %1034 = vperm.xlu0 %2240, %v956_v45   ;;  %v693_v45 = vld [vmem:[%s2745_s3 + $0x50] sm:$0xff] }
  0x4f   : > { %1279 = vperm.xlu1 %2241, %v1259_v46   ;;  %v925_v46 = vld [vmem:[%s2747_s5] sm:$0xff] }
  0x50   : > { %1274 = vperm.xlu0 %2240, %v1258_v47   ;;  %2026 = vmatprep.mubr.msk.f32.mxu0 %vm1037_vm3, %v925_v46  ;;  %v927_v46 = vld [vmem:[%s2747_s5 + $0x10] sm:$0xff] }
  0x53   : > { %1289 = vperm.xlu1 %2241, %v1261_v48  }
  0x54   : > { %1284 = vperm.xlu0 %2240, %v1260_v49  }
  0x57   : > { %1299 = vperm.xlu1 %2241, %v1263_v50  }
  0x58   : > { %1294 = vperm.xlu0 %2240, %v1262_v51  }
  0x5b   : > { %1309 = vperm.xlu1 %2241, %v1265_v52  }
  0x5c   : > { %1304 = vperm.xlu0 %2240, %v1264_v53  }
  0x5f   : > { %1450 = vperm.xlu1 %2241, %v1445_v54  }
  0x60   : > { %1314 = vperm.xlu0 %2240, %v1266_v55  }
  0x63   : > { %1460 = vperm.xlu1 %2241, %v1447_v56  }
  0x64   : > { %1455 = vperm.xlu0 %2240, %v1446_v57  }
  0x67   : > { %1567 = vperm.xlu1 %2241, %v1559_v58  }
  0x68   : > { %1562 = vperm.xlu0 %2240, %v1558_v59  }
  0x6c   : > { %1658 = vperm.xlu0 %2240, %v1655_v60  }
  0x86   : > { %v518_v63 = vpop.permute.xlu1 %517  ;;  %v508_v0 = vpop.permute.xlu0 %507 }
  0x8a   : > { %v523_v1 = vpop.permute.xlu1 %522  ;;  %v513_v2 = vpop.permute.xlu0 %512 }
  0x8e   : > { %v533_v11 = vpop.permute.xlu1 %532  ;;  %v528_v13 = vpop.permute.xlu0 %527 }
  0x92   : > { %v543_v24 = vpop.permute.xlu1 %542 }
  0x93   : > { %v538_v27 = vpop.permute.xlu0 %537 }
  0x96   : > { %v713_v51 = vpop.permute.xlu1 %712 }
  0x97   : > { %v708_v49 = vpop.permute.xlu0 %707 }
  0x9b   : > { %v718_v60 = vpop.permute.xlu0 %717 }
  0xe6   : > { %v1945_v3 = vpop.f32.mrb[0].mxu1 }
  0xe7   : > { %v642_v4 = vadd.f32 %v1945_v3, %v513_v2  ;;  %v636_v5 = vpop.f32.mrb[1].mxu1 }
  0xe8   : > { %v637_v7 = vadd.f32 %v636_v5, %v508_v0  ;;  %v723_v0 = vpop.permute.xlu1 %722 }
  0xe9   : > { %v676_v6 = vmax.f32 %v642_v4, 0.0 }
  0xea   : > { %v1948_v8 = vpop.f32.mrb[2].mxu1  ;;  %v675_v9 = vmax.f32 %v637_v7, 0.0 }
  0xeb   : > { %v652_v10 = vadd.f32 %v1948_v8, %v523_v1  ;;  %v646_v12 = vpop.f32.mrb[3].mxu1 }
  0xec   : > { %v2143_v14 = vpack.c.bf16 %v676_v6, %v675_v9  ;;  %v647_v16 = vadd.f32 %v646_v12, %v518_v63  ;;  %v728_v9 = vpop.permute.xlu0 %727 }
  0xed   : > { %v678_v15 = vmax.f32 %v652_v10, 0.0 }
  0xee   : > { %v1951_v17 = vpop.f32.mrb[4].mxu1  ;;  %v677_v18 = vmax.f32 %v647_v16, 0.0  ;;  %2144 = vmatpush3.bf16.msra.mxu1 %v2143_v14 }
  0xef   : > { %v662_v19 = vadd.f32 %v1951_v17, %v533_v11  ;;  %v656_v20 = vpop.f32.mrb[5].mxu1  ;;  %2145 = vmatprep.subr.bf16.mxu1 %v2255_v61  ;;  %v733_v11 = vpop.permute.xlu1 %732 }
  0xf0   : > { %v657_v21 = vadd.f32 %v656_v20, %v528_v13  ;;  %v2146_v22 = vpack.c.bf16 %v678_v15, %v677_v18  ;;  %v738_v20 = vpop.permute.xlu0 %737 }
  0xf1   : > { %v680_v23 = vmax.f32 %v662_v19, 0.0 }
  0xf2   : > { %v679_v25 = vmax.f32 %v657_v21, 0.0  ;;  %v1954_v26 = vpop.f32.mrb[6].mxu1  ;;  %2147 = vmatpush3.bf16.msra.mxu1 %v2146_v22 }
  0xf3   : > { %v672_v28 = vadd.f32 %v1954_v26, %v543_v24  ;;  %v666_v29 = vpop.f32.mrb[7].mxu1  ;;  %2148 = vmatprep.subr.bf16.mxu1 %v2255_v61  ;;  %v743_v22 = vpop.permute.xlu1 %742 }
  0xf4   : > { %v2149_v30 = vpack.c.bf16 %v680_v23, %v679_v25  ;;  %v667_v31 = vadd.f32 %v666_v29, %v538_v27 }
  0xf5   : > { %v682_v32 = vmax.f32 %v672_v28, 0.0 }
  0xf6   : > { %v681_v33 = vmax.f32 %v667_v31, 0.0  ;;  %2150 = vmatpush3.bf16.msra.mxu1 %v2149_v30  ;;  %v748_v31 = vpop.permute.xlu0 %747 }
  0xf7   : > { %2151 = vmatprep.subr.bf16.mxu1 %v2255_v61 }
  0xf8   : > { %v2152_v34 = vpack.c.bf16 %v682_v32, %v681_v33  ;;  %v753_v33 = vpop.permute.xlu1 %752 }
  0xfa   : > { %2153 = vmatpush3.bf16.msra.mxu1 %v2152_v34 }
  0xfb   : > { %2206 = vmatprep.subr.bf16.mxu1 %v2255_v61 }
  0xfd   : > { %1972 = vmatmul.mubr.msk.f32.vlgmr.msra.gmra.mrb[8].mxu1 %vm760_vm2, %v683_v35 }
  0xfe   : > { %1974 = vmatprep.mubr.msk.f32.mxu1 %vm2256_vm1, %v2257_v62 }
 0x101   : > { %1975 = vmatmul.mubr.msk.f32.gmra.mrb[10].mxu1 %vm760_vm2, %v684_v36 }
 0x102   : > { %1977 = vmatprep.mubr.msk.f32.mxu1 %vm2256_vm1, %v2257_v62 }
 0x105   : > { %1978 = vmatmul.mubr.msk.f32.gmra.mrb[12].mxu1 %vm760_vm2, %v685_v37 }
 0x106   : > { %1980 = vmatprep.mubr.msk.f32.mxu1 %vm2256_vm1, %v2257_v62 }
 0x109   : > { %1981 = vmatmul.mubr.msk.f32.gmra.mrb[14].mxu1 %vm760_vm2, %v686_v38 }
 0x10a   : > { %1983 = vmatprep.mubr.msk.f32.mxu1 %vm2256_vm1, %v2257_v62 }
 0x10d   : > { %1984 = vmatmul.mubr.msk.f32.gmra.mrb[16].mxu1 %vm760_vm2, %v687_v39  ;;  %v758_v39 = vpop.permute.xlu0 %757 }
 0x10e   : > { %1986 = vmatprep.mubr.msk.f32.mxu1 %vm2256_vm1, %v2257_v62 }
 0x111   : > { %1987 = vmatmul.mubr.msk.f32.gmra.mrb[18].mxu1 %vm760_vm2, %v688_v40 }
 0x112   : > { %1989 = vmatprep.mubr.msk.f32.mxu1 %vm2256_vm1, %v2257_v62 }
 0x115   : > { %1990 = vmatmul.mubr.msk.f32.gmra.mrb[20].mxu1 %vm760_vm2, %v689_v41 }
 0x116   : > { %1992 = vmatprep.mubr.msk.f32.mxu1 %vm2256_vm1, %v2257_v62 }
 0x119   : > { %1993 = vmatmul.mubr.msk.f32.gmra.mrb[22].mxu1 %vm760_vm2, %v690_v42 }
 0x11a   : > { %1995 = vmatprep.mubr.msk.f32.mxu1 %vm2256_vm1, %v2257_v62 }
 0x11d   : > { %1996 = vmatmul.mubr.msk.f32.gmra.mrb[24].mxu1 %vm760_vm2, %v691_v43 }
 0x11e   : > { %1998 = vmatprep.mubr.msk.f32.mxu1 %vm2256_vm1, %v2257_v62 }
 0x121   : > { %1999 = vmatmul.mubr.msk.f32.gmra.mrb[26].mxu1 %vm760_vm2, %v692_v44 }
 0x122   : > { %2001 = vmatprep.mubr.msk.f32.mxu1 %vm2256_vm1, %v2257_v62 }
 0x125   : > { %2002 = vmatmul.mubr.msk.f32.gmra.mrb[28].mxu1 %vm760_vm2, %v693_v45  ;;  %v926_v45 = vld [vmem:[%s2747_s5 + $0x8] sm:$0xff] }
 0x126   : > { %2117 = vmatprep.mubr.msk.f32.mxu1 %vm2256_vm1, %v2257_v62 }
 0x1d0   : > { %v860_v47 = vpop.f32.mrb[8].mxu1 }
 0x1d1   : > { %v1973_v48 = vpop.f32.mrb[9].mxu1  ;;  %v861_v50 = vadd.f32 %v860_v47, %v708_v49  ;;  %v928_v47 = vld [vmem:[%s2747_s5 + $0x18] sm:$0xff]  ;;  %v930_v49 = vld [vmem:[%s2747_s5 + $0x28] sm:$0xff] }
 0x1d2   : > { %v929_v48 = vld [vmem:[%s2747_s5 + $0x20] sm:$0xff] }
 0x1d3   : > { %v914_v55 = vmax.f32 %v861_v50, 0.0  ;;  %v931_v50 = vld [vmem:[%s2747_s5 + $0x30] sm:$0xff] }
 0x1d4   : > { %v865_v52 = vpop.f32.mrb[10].mxu1 }
 0x1d5   : > { %v866_v53 = vadd.f32 %v865_v52, %v713_v51  ;;  %v1976_v54 = vpop.f32.mrb[11].mxu1  ;;  %v932_v51 = vld [vmem:[%s2747_s5 + $0x38] sm:$0xff]  ;;  %v933_v52 = vld [vmem:[%s2747_s5 + $0x40] sm:$0xff] }
 0x1d6   : > { %v935_v54 = vld [vmem:[%s2747_s5 + $0x50] sm:$0xff] }
 0x1d7   : > { %v915_v56 = vmax.f32 %v866_v53, 0.0  ;;  %v934_v53 = vld [vmem:[%s2747_s5 + $0x48] sm:$0xff] }
 0x1d8   : > { %v870_v57 = vpop.f32.mrb[12].mxu1 }
 0x1d9   : > { %v1979_v58 = vpop.f32.mrb[13].mxu1  ;;  %v2154_v59 = vpack.c.bf16 %v915_v56, %v914_v55  ;;  %v871_v63 = vadd.f32 %v870_v57, %v718_v60  ;;  %v936_v55 = vld [vmem:[%s2747_s5 + $0x58] sm:$0xff]  ;;  %v937_v56 = vld [vmem:[%s2747_s5 + $0x60] sm:$0xff]  ;;  %v938_v57 = vld [vmem:[%s2747_s5 + $0x68] sm:$0xff] }
 0x1da   : > { %v939_v58 = vld [vmem:[%s2747_s5 + $0x70] sm:$0xff]  ;;  %v1247_v60 = vld [vmem:[%s2749_s7] sm:$0xff] }
 0x1db   : > { %2155 = vmatprep.subr.bf16.mxu0 %v2154_v59  ;;  %v916_v4 = vmax.f32 %v871_v63, 0.0  ;;  %v965_v63 = vpop.permute.xlu0 %964 }
 0x1dc   : > { %v875_v1 = vpop.f32.mrb[14].mxu1  ;;  %2157 = vmatpush3.bf16.msra.mxu0 %v2154_v59  ;;  %v940_v59 = vld [vmem:[%s2747_s5 + $0x78] sm:$0xff] }
 0x1dd   : > { %v876_v2 = vadd.f32 %v875_v1, %v723_v0  ;;  %v1982_v3 = vpop.f32.mrb[15].mxu1  ;;  %v960_v0 = vpop.permute.xlu1 %959 }
 0x1df   : > { %v917_v5 = vmax.f32 %v876_v2, 0.0  ;;  %v975_v1 = vpop.permute.xlu0 %974 }
 0x1e0   : > { %v880_v6 = vpop.f32.mrb[16].mxu1 }
 0x1e1   : > { %v2158_v7 = vpack.c.bf16 %v917_v5, %v916_v4  ;;  %v1985_v8 = vpop.f32.mrb[17].mxu1  ;;  %v881_v10 = vadd.f32 %v880_v6, %v728_v9  ;;  %v970_v2 = vpop.permute.xlu1 %969 }
 0x1e3   : > { %2159 = vmatprep.subr.bf16.mxu0 %v2158_v7  ;;  %v918_v15 = vmax.f32 %v881_v10, 0.0  ;;  %v985_v3 = vpop.permute.xlu0 %984 }
 0x1e4   : > { %v885_v12 = vpop.f32.mrb[18].mxu1  ;;  %2161 = vmatpush3.bf16.msra.mxu0 %v2158_v7 }
 0x1e5   : > { %v886_v13 = vadd.f32 %v885_v12, %v733_v11  ;;  %v1988_v14 = vpop.f32.mrb[19].mxu1  ;;  %v980_v4 = vpop.permute.xlu1 %979 }
 0x1e7   : > { %v919_v16 = vmax.f32 %v886_v13, 0.0  ;;  %v995_v10 = vpop.permute.xlu0 %994 }
 0x1e8   : > { %v890_v17 = vpop.f32.mrb[20].mxu1 }
 0x1e9   : > { %v2162_v18 = vpack.c.bf16 %v919_v16, %v918_v15  ;;  %v1991_v19 = vpop.f32.mrb[21].mxu1  ;;  %v891_v21 = vadd.f32 %v890_v17, %v738_v20  ;;  %v990_v13 = vpop.permute.xlu1 %989 }
 0x1eb   : > { %2163 = vmatprep.subr.bf16.mxu0 %v2162_v18  ;;  %v920_v26 = vmax.f32 %v891_v21, 0.0 }
 0x1ec   : > { %v895_v23 = vpop.f32.mrb[22].mxu1  ;;  %2165 = vmatpush3.bf16.msra.mxu0 %v2162_v18 }
 0x1ed   : > { %v896_v24 = vadd.f32 %v895_v23, %v743_v22  ;;  %v1994_v25 = vpop.f32.mrb[23].mxu1  ;;  %v1005_v23 = vpop.permute.xlu0 %1004 }
 0x1ef   : > { %v921_v27 = vmax.f32 %v896_v24, 0.0 }
 0x1f0   : > { %v900_v28 = vpop.f32.mrb[24].mxu1 }
 0x1f1   : > { %v2166_v29 = vpack.c.bf16 %v921_v27, %v920_v26  ;;  %v1997_v30 = vpop.f32.mrb[25].mxu1  ;;  %v901_v32 = vadd.f32 %v900_v28, %v748_v31  ;;  %v1000_v26 = vpop.permute.xlu1 %999 }
 0x1f3   : > { %2167 = vmatprep.subr.bf16.mxu0 %v2166_v29  ;;  %v922_v37 = vmax.f32 %v901_v32, 0.0 }
 0x1f4   : > { %v905_v34 = vpop.f32.mrb[26].mxu1  ;;  %2169 = vmatpush3.bf16.msra.mxu0 %v2166_v29 }
 0x1f5   : > { %v906_v35 = vadd.f32 %v905_v34, %v753_v33  ;;  %v2000_v36 = vpop.f32.mrb[27].mxu1 }
 0x1f7   : > { %v923_v38 = vmax.f32 %v906_v35, 0.0  ;;  %v1015_v35 = vpop.permute.xlu0 %1014 }
 0x1f8   : > { %v910_v40 = vpop.f32.mrb[28].mxu1 }
 0x1f9   : > { %v2170_v41 = vpack.c.bf16 %v923_v38, %v922_v37  ;;  %v911_v42 = vadd.f32 %v910_v40, %v758_v39  ;;  %v2003_v43 = vpop.f32.mrb[29].mxu1  ;;  %v1010_v38 = vpop.permute.xlu1 %1009 }
 0x1fb   : > { %v924_v44 = vmax.f32 %v911_v42, 0.0  ;;  %2171 = vmatprep.subr.bf16.mxu0 %v2170_v41 }
 0x1fc   : > { %2173 = vmatpush3.bf16.msra.mxu0 %v2170_v41 }
 0x1fd   : > { %2024 = vmatprep.subr.mxu0 %v924_v44 }
 0x200   : > { %2025 = vmatpush3.msra.mxu0 %v924_v44 }
 0x201   : > { %2027 = vmatmul.mubr.msk.f32.vlgmr.msra.gmra.mrb[0].mxu0 %vm1037_vm3, %v926_v45 }
 0x202   : > { %2029 = vmatprep.mubr.msk.f32.mxu0 %vm1037_vm3, %v927_v46 }
 0x205   : > { %2030 = vmatmul.mubr.msk.f32.gmra.mrb[2].mxu0 %vm1037_vm3, %v928_v47 }
 0x206   : > { %2032 = vmatprep.mubr.msk.f32.mxu0 %vm1037_vm3, %v929_v48  ;;  %v1025_v48 = vpop.permute.xlu0 %1024 }
 0x209   : > { %2033 = vmatmul.mubr.msk.f32.gmra.mrb[4].mxu0 %vm1037_vm3, %v930_v49 }
 0x20a   : > { %2035 = vmatprep.mubr.msk.f32.mxu0 %vm1037_vm3, %v931_v50 }
 0x20d   : > { %2036 = vmatmul.mubr.msk.f32.gmra.mrb[6].mxu0 %vm1037_vm3, %v932_v51  ;;  %v1020_v51 = vpop.permute.xlu1 %1019 }
 0x20e   : > { %2038 = vmatprep.mubr.msk.f32.mxu0 %vm1037_vm3, %v933_v52 }
 0x211   : > { %2039 = vmatmul.mubr.msk.f32.gmra.mrb[8].mxu0 %vm1037_vm3, %v934_v53 }
 0x212   : > { %2041 = vmatprep.mubr.msk.f32.mxu0 %vm1037_vm3, %v935_v54 }
 0x215   : > { %2042 = vmatmul.mubr.msk.f32.gmra.mrb[10].mxu0 %vm1037_vm3, %v936_v55 }
 0x216   : > { %2044 = vmatprep.mubr.msk.f32.mxu0 %vm1037_vm3, %v937_v56 }
 0x219   : > { %2045 = vmatmul.mubr.msk.f32.gmra.mrb[12].mxu0 %vm1037_vm3, %v938_v57 }
 0x21a   : > { %2047 = vmatprep.mubr.msk.f32.mxu0 %vm1037_vm3, %v939_v58 }
 0x21d   : > { %2048 = vmatmul.mubr.msk.f32.gmra.mrb[14].mxu0 %vm1037_vm3, %v940_v59 }
 0x21e   : > { %2082 = vmatprep.mubr.f32.mxu0 %v1247_v60  ;;  %v1035_v60 = vpop.permute.xlu0 %1034 }
 0x2d4   : > { %v2028_v5 = vpop.f32.mrb[0].mxu0 }
 0x2d5   : > { %v1158_v6 = vadd.f32 %v2028_v5, %v965_v63  ;;  %v1152_v7 = vpop.f32.mrb[1].mxu0 }
 0x2d6   : > { %v1153_v8 = vadd.f32 %v1152_v7, %v960_v0 }
 0x2d7   : > { %v1232_v9 = vmax.f32 %v1158_v6, 0.0 }
 0x2d8   : > { %v1231_v11 = vmax.f32 %v1153_v8, 0.0  ;;  %v2031_v12 = vpop.f32.mrb[2].mxu0 }
 0x2d9   : > { %v1168_v14 = vadd.f32 %v2031_v12, %v975_v1  ;;  %v1162_v15 = vpop.f32.mrb[3].mxu0  ;;  %v1030_v1 = vpop.permute.xlu1 %1029  ;;  %v1251_v12 = vld [vmem:[%s2749_s7 + $0x20] sm:$0xff] }
 0x2da   : > { %v2174_v16 = vpack.c.bf16 %v1232_v9, %v1231_v11  ;;  %v1163_v17 = vadd.f32 %v1162_v15, %v970_v2  ;;  %v1248_v9 = vld [vmem:[%s2749_s7 + $0x8] sm:$0xff]  ;;  %v1250_v11 = vld [vmem:[%s2749_s7 + $0x18] sm:$0xff] }
 0x2db   : > { %v1234_v18 = vmax.f32 %v1168_v14, 0.0  ;;  %v1253_v14 = vld [vmem:[%s2749_s7 + $0x30] sm:$0xff]  ;;  %v1254_v15 = vld [vmem:[%s2749_s7 + $0x38] sm:$0xff] }
 0x2dc   : > { %v1233_v19 = vmax.f32 %v1163_v17, 0.0  ;;  %v2034_v20 = vpop.f32.mrb[4].mxu0  ;;  %2175 = vmatprep.subr.bf16.mxu0 %v2174_v16  ;;  %v1256_v17 = vld [vmem:[%s2749_s7 + $0x48] sm:$0xff] }
 0x2dd   : > { %v1178_v21 = vadd.f32 %v2034_v20, %v985_v3  ;;  %v1172_v22 = vpop.f32.mrb[5].mxu0  ;;  %2177 = vmatpush3.bf16.msra.mxu0 %v2174_v16  ;;  %v1255_v16 = vld [vmem:[%s2749_s7 + $0x40] sm:$0xff] }
 0x2de   : > { %v2178_v24 = vpack.c.bf16 %v1234_v18, %v1233_v19  ;;  %v1173_v25 = vadd.f32 %v1172_v22, %v980_v4  ;;  %v1275_v18 = vpop.permute.xlu0 %1274  ;;  %v1270_v19 = vpop.permute.xlu1 %1269 }
 0x2df   : > { %v1236_v27 = vmax.f32 %v1178_v21, 0.0 }
 0x2e0   : > { %v1235_v28 = vmax.f32 %v1173_v25, 0.0  ;;  %v2037_v29 = vpop.f32.mrb[6].mxu0  ;;  %2179 = vmatprep.subr.bf16.mxu0 %v2178_v24 }
 0x2e1   : > { %v1188_v30 = vadd.f32 %v2037_v29, %v995_v10  ;;  %v1182_v31 = vpop.f32.mrb[7].mxu0  ;;  %2181 = vmatpush3.bf16.msra.mxu0 %v2178_v24  ;;  %v1249_v10 = vld [vmem:[%s2749_s7 + $0x10] sm:$0xff] }
 0x2e2   : > { %v2182_v32 = vpack.c.bf16 %v1236_v27, %v1235_v28  ;;  %v1183_v33 = vadd.f32 %v1182_v31, %v990_v13  ;;  %v1252_v13 = vld [vmem:[%s2749_s7 + $0x28] sm:$0xff]  ;;  %v1285_v20 = vpop.permute.xlu0 %1284  ;;  %v1280_v21 = vpop.permute.xlu1 %1279 }
 0x2e3   : > { %v1238_v34 = vmax.f32 %v1188_v30, 0.0 }
 0x2e4   : > { %v1237_v36 = vmax.f32 %v1183_v33, 0.0  ;;  %v2040_v37 = vpop.f32.mrb[8].mxu0  ;;  %2183 = vmatprep.subr.bf16.mxu0 %v2182_v32 }
 0x2e5   : > { %v1198_v39 = vadd.f32 %v2040_v37, %v1005_v23  ;;  %v1192_v40 = vpop.f32.mrb[9].mxu0  ;;  %2185 = vmatpush3.bf16.msra.mxu0 %v2182_v32 }
 0x2e6   : > { %v2186_v41 = vpack.c.bf16 %v1238_v34, %v1237_v36  ;;  %v1193_v42 = vadd.f32 %v1192_v40, %v1000_v26  ;;  %v1295_v27 = vpop.permute.xlu0 %1294  ;;  %v1290_v30 = vpop.permute.xlu1 %1289 }
 0x2e7   : > { %v1240_v43 = vmax.f32 %v1198_v39, 0.0 }
 0x2e8   : > { %v1239_v44 = vmax.f32 %v1193_v42, 0.0  ;;  %v2043_v45 = vpop.f32.mrb[10].mxu0  ;;  %2187 = vmatprep.subr.bf16.mxu0 %v2186_v41 }
 0x2e9   : > { %v1208_v46 = vadd.f32 %v2043_v45, %v1015_v35  ;;  %v1202_v47 = vpop.f32.mrb[11].mxu0  ;;  %2189 = vmatpush3.bf16.msra.mxu0 %v2186_v41 }
 0x2ea   : > { %v2190_v49 = vpack.c.bf16 %v1240_v43, %v1239_v44  ;;  %v1203_v50 = vadd.f32 %v1202_v47, %v1010_v38  ;;  %v1305_v40 = vpop.permute.xlu0 %1304  ;;  %v1300_v43 = vpop.permute.xlu1 %1299 }
 0x2eb   : > { %v1242_v52 = vmax.f32 %v1208_v46, 0.0 }
 0x2ec   : > { %v1241_v53 = vmax.f32 %v1203_v50, 0.0  ;;  %v2046_v54 = vpop.f32.mrb[12].mxu0  ;;  %2191 = vmatprep.subr.bf16.mxu0 %v2190_v49 }
 0x2ed   : > { %v1218_v55 = vadd.f32 %v2046_v54, %v1025_v48  ;;  %v1212_v56 = vpop.f32.mrb[13].mxu0  ;;  %2193 = vmatpush3.bf16.msra.mxu0 %v2190_v49 }
 0x2ee   : > { %v2194_v57 = vpack.c.bf16 %v1242_v52, %v1241_v53  ;;  %v1213_v58 = vadd.f32 %v1212_v56, %v1020_v51  ;;  %v1315_v52 = vpop.permute.xlu0 %1314 }
 0x2ef   : > { %v1244_v59 = vmax.f32 %v1218_v55, 0.0  ;;  %v1310_v55 = vpop.permute.xlu1 %1309 }
 0x2f0   : > { %v1243_v63 = vmax.f32 %v1213_v58, 0.0  ;;  %v2049_v0 = vpop.f32.mrb[14].mxu0  ;;  %2195 = vmatprep.subr.bf16.mxu0 %v2194_v57 }
 0x2f1   : > { %v1228_v2 = vadd.f32 %v2049_v0, %v1035_v60  ;;  %v1222_v3 = vpop.f32.mrb[15].mxu0  ;;  %2197 = vmatpush3.bf16.msra.mxu0 %v2194_v57 }
 0x2f2   : > { %v2198_v4 = vpack.c.bf16 %v1244_v59, %v1243_v63  ;;  %v1223_v5 = vadd.f32 %v1222_v3, %v1030_v1  ;;  %v1442_v1 = vld [vmem:[%s2751_s9] sm:$0xff] }
 0x2f3   : > { %v1246_v6 = vmax.f32 %v1228_v2, 0.0  ;;  %v1443_v2 = vld [vmem:[%s2751_s9 + $0x8] sm:$0xff]  ;;  %v1556_v3 = vld [vmem:[%s2753_s11] sm:$0xff] }
 0x2f4   : > { %v1245_v7 = vmax.f32 %v1223_v5, 0.0  ;;  %2199 = vmatprep.subr.bf16.mxu0 %v2198_v4 }
 0x2f5   : > { %2201 = vmatpush3.bf16.msra.mxu0 %v2198_v4 }
 0x2f6   : > { %v2202_v8 = vpack.c.bf16 %v1246_v6, %v1245_v7  ;;  %v1451_v6 = vpop.permute.xlu1 %1450 }
 0x2f8   : > { %2203 = vmatprep.subr.bf16.mxu0 %v2202_v8 }
 0x2f9   : > { %2205 = vmatpush3.bf16.msra.mxu0 %v2202_v8  ;;  %v1456_v8 = vpop.permute.xlu0 %1455 }
 0x2fa   : > { %2225 = vmatprep.subr.bf16.mxu0 %v2255_v61 }
 0x2fc   : > { %2083 = vmatmul.mubr.f32.vlgmr.msra.gmra.mrb[16].mxu0 %v1248_v9 }
 0x2fd   : > { %2085 = vmatprep.mubr.f32.mxu0 %v1249_v10 }
 0x300   : > { %2086 = vmatmul.mubr.f32.gmra.mrb[18].mxu0 %v1250_v11 }
 0x301   : > { %2088 = vmatprep.mubr.f32.mxu0 %v1251_v12 }
 0x304   : > { %2089 = vmatmul.mubr.f32.gmra.mrb[20].mxu0 %v1252_v13  ;;  %v1461_v13 = vpop.permute.xlu1 %1460 }
 0x305   : > { %2091 = vmatprep.mubr.f32.mxu0 %v1253_v14 }
 0x308   : > { %2092 = vmatmul.mubr.f32.gmra.mrb[22].mxu0 %v1254_v15 }
 0x309   : > { %2094 = vmatprep.mubr.f32.mxu0 %v1255_v16 }
 0x30c   : > { %2095 = vmatmul.mubr.f32.gmra.mrb[24].mxu0 %v1256_v17 }
 0x30d   : > { %2139 = vmatprep.mubr.msk.f32.mxu0 %vm2256_vm1, %v2257_v62 }
 0x3cf   : > { %v2084_v22 = vpop.f32.mrb[16].mxu0 }
 0x3d0   : > { %v1389_v23 = vadd.f32 %v2084_v22, %v1275_v18  ;;  %v1383_v24 = vpop.f32.mrb[17].mxu0  ;;  %v1563_v22 = vpop.permute.xlu0 %1562 }
 0x3d1   : > { %v1384_v25 = vadd.f32 %v1383_v24, %v1270_v19  ;;  %v1557_v19 = vld [vmem:[%s2753_s11 + $0x8] sm:$0xff] }
 0x3d2   : > { %v1433_v26 = vmax.f32 %v1389_v23, 0.0 }
 0x3d3   : > { %v1432_v28 = vmax.f32 %v1384_v25, 0.0  ;;  %v2087_v29 = vpop.f32.mrb[18].mxu0 }
 0x3d4   : > { %v1399_v31 = vadd.f32 %v2087_v29, %v1285_v20  ;;  %v1393_v32 = vpop.f32.mrb[19].mxu0  ;;  %v1568_v20 = vpop.permute.xlu1 %1567  ;;  %v1654_v29 = vld [vmem:[%s2755_s13] sm:$0xff] }
 0x3d5   : > { %v2207_v33 = vpack.c.bf16 %v1433_v26, %v1432_v28  ;;  %v1394_v34 = vadd.f32 %v1393_v32, %v1280_v21 }
 0x3d6   : > { %v1435_v35 = vmax.f32 %v1399_v31, 0.0 }
 0x3d7   : > { %v1434_v36 = vmax.f32 %v1394_v34, 0.0  ;;  %v2090_v37 = vpop.f32.mrb[20].mxu0  ;;  %2208 = vmatpush3.bf16.msra.mxu1 %v2207_v33 }
 0x3d8   : > { %v1409_v38 = vadd.f32 %v2090_v37, %v1295_v27  ;;  %v1403_v39 = vpop.f32.mrb[21].mxu0  ;;  %2209 = vmatprep.subr.bf16.mxu1 %v2255_v61 }
 0x3d9   : > { %v2210_v41 = vpack.c.bf16 %v1435_v35, %v1434_v36  ;;  %v1404_v42 = vadd.f32 %v1403_v39, %v1290_v30  ;;  %v1659_v30 = vpop.permute.xlu0 %1658 }
 0x3da   : > { %v1437_v44 = vmax.f32 %v1409_v38, 0.0 }
 0x3db   : > { %v1436_v45 = vmax.f32 %v1404_v42, 0.0  ;;  %v2093_v46 = vpop.f32.mrb[22].mxu0  ;;  %2211 = vmatpush3.bf16.msra.mxu1 %v2210_v41 }
 0x3dc   : > { %v1419_v47 = vadd.f32 %v2093_v46, %v1305_v40  ;;  %v1413_v48 = vpop.f32.mrb[23].mxu0  ;;  %2212 = vmatprep.subr.bf16.mxu1 %v2255_v61 }
 0x3dd   : > { %v2213_v49 = vpack.c.bf16 %v1437_v44, %v1436_v45  ;;  %v1414_v50 = vadd.f32 %v1413_v48, %v1300_v43 }
 0x3de   : > { %v1439_v51 = vmax.f32 %v1419_v47, 0.0 }
 0x3df   : > { %v1438_v53 = vmax.f32 %v1414_v50, 0.0  ;;  %v2096_v54 = vpop.f32.mrb[24].mxu0  ;;  %2214 = vmatpush3.bf16.msra.mxu1 %v2213_v49 }
 0x3e0   : > { %v1429_v56 = vadd.f32 %v2096_v54, %v1315_v52  ;;  %v1423_v57 = vpop.f32.mrb[25].mxu0  ;;  %2215 = vmatprep.subr.bf16.mxu1 %v2255_v61 }
 0x3e1   : > { %v2216_v58 = vpack.c.bf16 %v1439_v51, %v1438_v53  ;;  %v1424_v59 = vadd.f32 %v1423_v57, %v1310_v55 }
 0x3e2   : > { %v1441_v60 = vmax.f32 %v1429_v56, 0.0 }
 0x3e3   : > { %v1440_v63 = vmax.f32 %v1424_v59, 0.0  ;;  %2217 = vmatpush3.bf16.msra.mxu1 %v2216_v58 }
 0x3e4   : > { %2218 = vmatprep.subr.bf16.mxu1 %v2255_v61  ;;  %v1444_v61 = vld [vmem:[%s2751_s9 + $0x10] sm:$0xff] }
 0x3e5   : > { %v2219_v0 = vpack.c.bf16 %v1441_v60, %v1440_v63 }
 0x3e7   : > { %2220 = vmatpush3.bf16.msra.mxu1 %v2219_v0 }
 0x3ea   : > { %2118 = vmatmul.mubr.msk.f32.vlgmr.msra.gmra.mrb[30].mxu1 %vm1463_vm4, %v1442_v1 }
 0x3eb   : > { %2120 = vmatprep.mubr.msk.f32.mxu1 %vm2256_vm1, %v2257_v62 }
 0x3ee   : > { %2121 = vmatmul.mubr.msk.f32.gmra.mrb[32].mxu1 %vm1463_vm4, %v1443_v2 }
 0x3ef   : > { %2123 = vmatprep.mubr.msk.f32.mxu1 %vm2256_vm1, %v2257_v62 }
 0x3f2   : > { %2124 = vmatmul.mubr.msk.f32.gmra.mrb[34].mxu1 %vm1463_vm4, %v1444_v61 }
 0x3f3   : > { %2132 = vmatprep.mubr.msk.f32.mxu1 %vm1570_vm5, %v1556_v3 }
 0x4bd   : > { %v1539_v4 = vpop.f32.mrb[30].mxu1 }
 0x4be   : > { %v2119_v5 = vpop.f32.mrb[31].mxu1  ;;  %v1540_v7 = vadd.f32 %v1539_v4, %v1451_v6 }
 0x4c0   : > { %v1553_v11 = vmax.f32 %v1540_v7, 0.0 }
 0x4c1   : > { %v1544_v9 = vpop.f32.mrb[32].mxu1 }
 0x4c2   : > { %v1545_v10 = vadd.f32 %v1544_v9, %v1456_v8  ;;  %v2122_v62 = vpop.f32.mrb[33].mxu1 }
 0x4c4   : > { %v1554_v12 = vmax.f32 %v1545_v10, 0.0 }
 0x4c5   : > { %v1549_v14 = vpop.f32.mrb[34].mxu1 }
 0x4c6   : > { %v2221_v15 = vpack.c.bf16 %v1554_v12, %v1553_v11  ;;  %v1550_v16 = vadd.f32 %v1549_v14, %v1461_v13  ;;  %v2125_v17 = vpop.f32.mrb[35].mxu1 }
 0x4c8   : > { %v1555_v18 = vmax.f32 %v1550_v16, 0.0  ;;  %2222 = vmatprep.subr.bf16.mxu1 %v2221_v15 }
 0x4c9   : > { %2224 = vmatpush3.bf16.msra.mxu1 %v2221_v15 }
 0x4ca   : > { %2130 = vmatprep.subr.mxu1 %v1555_v18 }
 0x4cd   : > { %2131 = vmatpush3.msra.mxu1 %v1555_v18 }
 0x4ce   : > { %2133 = vmatmul.mubr.msk.f32.vlgmr.msra.gmra.mrb[36].mxu1 %vm1570_vm5, %v1557_v19 }
 0x5a1   : > { %v2134_v21 = vpop.f32.mrb[36].mxu1 }
 0x5a2   : > { %v1649_v23 = vadd.f32 %v2134_v21, %v1568_v20  ;;  %v1643_v24 = vpop.f32.mrb[37].mxu1 }
 0x5a3   : > { %v1644_v25 = vadd.f32 %v1643_v24, %v1563_v22 }
 0x5a4   : > { %v1653_v26 = vmax.f32 %v1649_v23, 0.0 }
 0x5a5   : > { %v1652_v27 = vmax.f32 %v1644_v25, 0.0 }
 0x5a7   : > { %v2226_v28 = vpack.c.bf16 %v1653_v26, %v1652_v27 }
 0x5a9   : > { %2227 = vmatpush3.bf16.msra.mxu0 %v2226_v28 }
 0x5ac   : > { %2140 = vmatmul.mubr.msk.f32.vlgmr.msra.gmra.mrb[26].mxu0 %vm1661_vm6, %v1654_v29 }
 0x67f   : > { %v1731_v31 = vpop.f32.mrb[26].mxu0 }
 0x680   : > { %v1732_v32 = vadd.f32 %v1731_v31, %v1659_v30  ;;  %v2141_v33 = vpop.f32.mrb[27].mxu0 }
 0x682   : > { %v1836_v34 = vmul.f32 -1.442695, %v1732_v32 }
 0x684   : > { %2242 = vpow2.f32 %v1836_v34 }
 0x68e   : > { %v2243_v35 = vpop.eup %2242 }
 0x68f   : > { %v1738_v36 = vadd.f32 1.0, %v2243_v35 }
 0x691   : > { %2244 = vrcp.f32 %v1738_v36 }
 0x69b   : > { %v2245_v37 = vpop.eup %2244 }
 0x69c   : > { %1741 = vst [vmem:[%s487_s22] sm:$0x1] %v2245_v37 }
 0x69d PF: > { %s25_s18 = sadd.s32 1, %s2252_s18  }
 0x69e   : > { %p22_p4 = scmp.ge.s32.totalorder %s25_s18, 4  }
 0x6a0   :  { %24 = sbr.rel (!%p22_p4) target bundleno = 1 (0x1), region = 110 }

</bundles_post_ra>
